<compile_context>
chip_gen: v5e
topology: v5e:2x2
jax: 0.10.0
libtpu: 0.0.40
codegen_flags: <defaults>
</compile_context>

<pallas_src>
import functools

import jax
import jax.numpy as jnp
from jax import lax
from jax.experimental import pallas as pl
from jax.experimental.pallas import tpu as pltpu


def _round_up(n, m):
    return ((n + m - 1) // m) * m


# ------------------------------ Pallas kernel ------------------------------ #

def encoder_kernel(x_ref, w1_ref, b1_ref, w2_ref, b2_ref, w34_ref, b34_ref,
                   out_ref, *, latent_dim):
    # In-kernel bf16 cast of the input tile (avoids a wrapper-side HBM pass).
    x = x_ref[...].astype(jnp.bfloat16)
    # Layer 1: bf16 matmul, f32 accumulate / bias / ReLU.
    h = jnp.dot(x, w1_ref[...], preferred_element_type=jnp.float32)
    h = jnp.maximum(h + b1_ref[...], 0.0)
    # Layer 2
    h = jnp.dot(h.astype(jnp.bfloat16), w2_ref[...],
                preferred_element_type=jnp.float32)
    h = jnp.maximum(h + b2_ref[...], 0.0)
    # Fused latent projection + [mu | logvar] head: single (tm,256)@(256,2*lat).
    ml = jnp.dot(h.astype(jnp.bfloat16), w34_ref[...],
                 preferred_element_type=jnp.float32)
    ml = ml + b34_ref[...]
    # Clamp only the logvar lanes (VPU select on a lane iota mask).
    lane = lax.broadcasted_iota(jnp.int32, ml.shape, dimension=1)
    out_ref[...] = jnp.where(lane >= latent_dim,
                             jnp.clip(ml, -10.0, 10.0), ml)


# ------------------------------ pallas_call wrapper ------------------------ #

def run_encoder(x, params, latent_dim):
    """x: (B, in_dim) f32. Returns (mu, logvar), each (B, latent_dim) f32."""
    b, in_dim = x.shape
    out_dim = 2 * latent_dim
    hidden = params["w1"].shape[1]

    # Batch tiling (sublane granularity). For B > 64 use >= 2 grid steps so the
    # "parallel" axis can shard across both TensorCores on v7x; cap tiles at
    # 1024 rows (VMEM stays a few MiB, well under scoped limits on all gens).
    if b <= 64:
        tm = max(_round_up(b, 8), 8)
    else:
        tm = min(1024, _round_up(pl.cdiv(b, 2), 8))
    grid = (pl.cdiv(b, tm),)

    def _full(arr):
        nd = arr.ndim
        return pl.BlockSpec(arr.shape, lambda i, _nd=nd: (0,) * _nd)

    flops = 2 * b * (in_dim * hidden + hidden * hidden + hidden * out_dim)
    bytes_accessed = (
        int(x.size) * 4 + b * out_dim * 4
        + sum(int(p.size) * p.dtype.itemsize for p in params.values()))

    out = pl.pallas_call(
        functools.partial(encoder_kernel, latent_dim=latent_dim),
        out_shape=jax.ShapeDtypeStruct((b, out_dim), jnp.float32),
        grid=grid,
        in_specs=[
            pl.BlockSpec((tm, in_dim), lambda i: (i, 0)),
            _full(params["w1"]), _full(params["b1"]),
            _full(params["w2"]), _full(params["b2"]),
            _full(params["w34"]), _full(params["b34"]),
        ],
        out_specs=pl.BlockSpec((tm, out_dim), lambda i: (i, 0)),
        compiler_params=pltpu.CompilerParams(
            dimension_semantics=("parallel",)),
        cost_estimate=pl.CostEstimate(
            flops=flops, transcendentals=0, bytes_accessed=bytes_accessed),
    )(x, params["w1"], params["b1"], params["w2"], params["b2"],
      params["w34"], params["b34"])

    return out[:, :latent_dim], out[:, latent_dim:]


# ------------------------------ parameter init ----------------------------- #

def _linear_params_f32(key, fan_in, fan_out):
    # Matches PyTorch nn.Linear defaults: W, b ~ U(-1/sqrt(fan_in), 1/sqrt(fan_in)).
    kw, kb = jax.random.split(key)
    bound = 1.0 / (fan_in ** 0.5)
    w = jax.random.uniform(kw, (fan_in, fan_out), jnp.float32, -bound, bound)
    b = jax.random.uniform(kb, (1, fan_out), jnp.float32, -bound, bound)
    return w, b


def init_encoder(key, input_dim, latent_dim, hidden=(256, 256)):
    k1, k2, k3, kmu, klv = jax.random.split(key, 5)
    w1, b1 = _linear_params_f32(k1, input_dim, hidden[0])
    w2, b2 = _linear_params_f32(k2, hidden[0], hidden[1])
    w3, b3 = _linear_params_f32(k3, hidden[1], latent_dim)
    wmu, bmu = _linear_params_f32(kmu, latent_dim, latent_dim)
    wlv, blv = _linear_params_f32(klv, latent_dim, latent_dim)

    # Head columns: [ mu | logvar ].
    whead = jnp.concatenate([wmu, wlv], axis=1)     # (lat, 2*lat)
    bhead = jnp.concatenate([bmu, blv], axis=1)     # (1, 2*lat)

    # Fold latent projection into the head (exact: no nonlinearity in between):
    #   (h @ w3 + b3) @ whead + bhead  ==  h @ (w3 @ whead) + (b3 @ whead + bhead)
    w34 = w3 @ whead                                 # (256, 2*lat) f32 master
    b34 = b3 @ whead + bhead                         # (1, 2*lat) f32

    return dict(w1=w1.astype(jnp.bfloat16), b1=b1,
                w2=w2.astype(jnp.bfloat16), b2=b2,
                w34=w34.astype(jnp.bfloat16), b34=b34)


# ------------------------------ pure-JAX reference -------------------------- #

def encoder_reference(x, p, latent_dim):
    def bdot(a, w):
        return jnp.dot(a.astype(jnp.bfloat16), w,
                       preferred_element_type=jnp.float32)
    h = jnp.maximum(bdot(x, p["w1"]) + p["b1"], 0.0)
    h = jnp.maximum(bdot(h, p["w2"]) + p["b2"], 0.0)
    ml = bdot(h, p["w34"]) + p["b34"]
    mu = ml[:, :latent_dim]
    logvar = jnp.clip(ml[:, latent_dim:], -10.0, 10.0)
    return mu, logvar


# ----------------------------------- main ----------------------------------- #

if __name__ == "__main__":
    B, IN_DIM, LATENT = 8, 16, 8
    HIDDEN = (256, 256)

    root = jax.random.PRNGKey(0)
    k_params, k_x, k_x2 = jax.random.split(root, 3)

    params = init_encoder(k_params, IN_DIM, LATENT, HIDDEN)

    # Small batch: single grid step, block == full array (no raggedness).
    x = jax.random.normal(k_x, (B, IN_DIM), jnp.float32)
    mu, logvar = run_encoder(x, params, LATENT)
    jax.block_until_ready((mu, logvar))
    mu_ref, lv_ref = encoder_reference(x, params, LATENT)
    assert mu.shape == (B, LATENT) and logvar.shape == (B, LATENT)
    assert bool(jnp.all(logvar <= 10.0)) and bool(jnp.all(logvar >= -10.0))
    assert bool(jnp.allclose(mu, mu_ref, rtol=2e-3, atol=2e-3))
    assert bool(jnp.allclose(logvar, lv_ref, rtol=2e-3, atol=2e-3))

    # Larger batch: 2 grid steps with a ragged last tile (B=100 -> tm=56).
    B2 = 100
    x2 = jax.random.normal(k_x2, (B2, IN_DIM), jnp.float32)
    mu2, lv2 = run_encoder(x2, params, LATENT)
    jax.block_until_ready((mu2, lv2))
    mu2_ref, lv2_ref = encoder_reference(x2, params, LATENT)
    assert mu2.shape == (B2, LATENT) and lv2.shape == (B2, LATENT)
    assert bool(jnp.allclose(mu2, mu2_ref, rtol=2e-3, atol=2e-3))
    assert bool(jnp.allclose(lv2, lv2_ref, rtol=2e-3, atol=2e-3))

    print("KERNEL_OK")
</pallas_src>

<mosaic_0001>
module attributes {stable_mosaic.version = 11 : i64} {
  func.func @encoder_kernel(%arg0: i32, %arg1: memref<8x16xf32, #tpu.memory_space<vmem>>, %arg2: memref<16x256xbf16, #tpu.memory_space<vmem>>, %arg3: memref<1x256xf32, #tpu.memory_space<vmem>>, %arg4: memref<256x256xbf16, #tpu.memory_space<vmem>>, %arg5: memref<1x256xf32, #tpu.memory_space<vmem>>, %arg6: memref<256x16xbf16, #tpu.memory_space<vmem>>, %arg7: memref<1x16xf32, #tpu.memory_space<vmem>>, %arg8: memref<8x16xf32, #tpu.memory_space<vmem>>) attributes {dimension_semantics = [#tpu.dimension_semantics<parallel>], iteration_bounds = array<i64: 1>, scalar_prefetch = 0 : i64, scratch_operands = 0 : i64, tpu.core_type = #tpu.core_type<tc>, window_params = [{transform_indices = @transform_0, window_bounds = array<i64: 8, 16>}, {pipeline_mode = #tpu.pipeline_mode<synchronous>, transform_indices = @transform_1, window_bounds = array<i64: 16, 256>}, {pipeline_mode = #tpu.pipeline_mode<synchronous>, transform_indices = @transform_2, window_bounds = array<i64: 1, 256>}, {pipeline_mode = #tpu.pipeline_mode<synchronous>, transform_indices = @transform_3, window_bounds = array<i64: 256, 256>}, {pipeline_mode = #tpu.pipeline_mode<synchronous>, transform_indices = @transform_4, window_bounds = array<i64: 1, 256>}, {pipeline_mode = #tpu.pipeline_mode<synchronous>, transform_indices = @transform_5, window_bounds = array<i64: 256, 16>}, {pipeline_mode = #tpu.pipeline_mode<synchronous>, transform_indices = @transform_6, window_bounds = array<i64: 1, 16>}, {transform_indices = @transform_7, window_bounds = array<i64: 8, 16>}]} {
    %c0 = arith.constant 0 : index
    %c0_0 = arith.constant 0 : index
    %0 = vector.load %arg1[%c0, %c0_0] : memref<8x16xf32, #tpu.memory_space<vmem>>, vector<8x16xf32>
    %1 = arith.truncf %0 : vector<8x16xf32> to vector<8x16xbf16>
    %c0_1 = arith.constant 0 : index
    %c0_2 = arith.constant 0 : index
    %2 = vector.load %arg2[%c0_1, %c0_2] : memref<16x256xbf16, #tpu.memory_space<vmem>>, vector<16x256xbf16>
    %cst = arith.constant dense<0.000000e+00> : vector<8x256xf32>
    %3 = tpu.matmul %1, %2, %cst {dimension_numbers = #tpu.dot_dimension_numbers<[1], [0], [0], [1], [0, 0, 1, 1], [], []>} : vector<8x16xbf16>, vector<16x256xbf16>, vector<8x256xf32> -> vector<8x256xf32>
    %c0_3 = arith.constant 0 : index
    %c0_4 = arith.constant 0 : index
    %4 = vector.load %arg3[%c0_3, %c0_4] : memref<1x256xf32, #tpu.memory_space<vmem>>, vector<1x256xf32>
    %5 = vector.broadcast %4 : vector<1x256xf32> to vector<8x256xf32>
    %6 = arith.addf %3, %5 : vector<8x256xf32>
    %cst_5 = arith.constant 0.000000e+00 : f32
    %7 = vector.broadcast %cst_5 : f32 to vector<8x256xf32>
    %8 = arith.maximumf %6, %7 : vector<8x256xf32>
    %9 = arith.truncf %8 : vector<8x256xf32> to vector<8x256xbf16>
    %c0_6 = arith.constant 0 : index
    %c0_7 = arith.constant 0 : index
    %10 = vector.load %arg4[%c0_6, %c0_7] : memref<256x256xbf16, #tpu.memory_space<vmem>>, vector<256x256xbf16>
    %cst_8 = arith.constant dense<0.000000e+00> : vector<8x256xf32>
    %11 = tpu.matmul %9, %10, %cst_8 {dimension_numbers = #tpu.dot_dimension_numbers<[1], [0], [0], [1], [0, 0, 1, 1], [], []>} : vector<8x256xbf16>, vector<256x256xbf16>, vector<8x256xf32> -> vector<8x256xf32>
    %c0_9 = arith.constant 0 : index
    %c0_10 = arith.constant 0 : index
    %12 = vector.load %arg5[%c0_9, %c0_10] : memref<1x256xf32, #tpu.memory_space<vmem>>, vector<1x256xf32>
    %13 = vector.broadcast %12 : vector<1x256xf32> to vector<8x256xf32>
    %14 = arith.addf %11, %13 : vector<8x256xf32>
    %cst_11 = arith.constant 0.000000e+00 : f32
    %15 = vector.broadcast %cst_11 : f32 to vector<8x256xf32>
    %16 = arith.maximumf %14, %15 : vector<8x256xf32>
    %17 = arith.truncf %16 : vector<8x256xf32> to vector<8x256xbf16>
    %c0_12 = arith.constant 0 : index
    %c0_13 = arith.constant 0 : index
    %18 = vector.load %arg6[%c0_12, %c0_13] : memref<256x16xbf16, #tpu.memory_space<vmem>>, vector<256x16xbf16>
    %cst_14 = arith.constant dense<0.000000e+00> : vector<8x16xf32>
    %19 = tpu.matmul %17, %18, %cst_14 {dimension_numbers = #tpu.dot_dimension_numbers<[1], [0], [0], [1], [0, 0, 1, 1], [], []>} : vector<8x256xbf16>, vector<256x16xbf16>, vector<8x16xf32> -> vector<8x16xf32>
    %c0_15 = arith.constant 0 : index
    %c0_16 = arith.constant 0 : index
    %20 = vector.load %arg7[%c0_15, %c0_16] : memref<1x16xf32, #tpu.memory_space<vmem>>, vector<1x16xf32>
    %21 = vector.broadcast %20 : vector<1x16xf32> to vector<8x16xf32>
    %22 = arith.addf %19, %21 : vector<8x16xf32>
    %23 = tpu.iota {dimensions = array<i32: 1>} : vector<8x16xi32>
    %c8_i32 = arith.constant 8 : i32
    %24 = vector.broadcast %c8_i32 : i32 to vector<8x16xi32>
    %25 = arith.cmpi sge, %23, %24 : vector<8x16xi32>
    %cst_17 = arith.constant -1.000000e+01 : f32
    %cst_18 = arith.constant 1.000000e+01 : f32
    %26 = vector.broadcast %cst_17 : f32 to vector<8x16xf32>
    %27 = arith.maximumf %26, %22 : vector<8x16xf32>
    %28 = vector.broadcast %cst_18 : f32 to vector<8x16xf32>
    %29 = arith.minimumf %28, %27 : vector<8x16xf32>
    %30 = arith.select %25, %29, %22 : vector<8x16xi1>, vector<8x16xf32>
    %c0_19 = arith.constant 0 : index
    %c0_20 = arith.constant 0 : index
    %31 = vector.load %arg8[%c0_19, %c0_20] : memref<8x16xf32, #tpu.memory_space<vmem>>, vector<8x16xf32>
    tpu.vector_store %arg8[%c0_19, %c0_20], %30 {strides = array<i32>} : memref<8x16xf32, #tpu.memory_space<vmem>>, vector<8x16xf32>,
    return
  }
  func.func @transform_0(%arg0: i32) -> (i32, i32) {
    %c0_i32 = arith.constant 0 : i32
    %c0_i32_0 = arith.constant 0 : i32
    return %arg0, %c0_i32 : i32, i32
  }
  func.func @transform_1(%arg0: i32) -> (i32, i32) {
    %c0_i32 = arith.constant 0 : i32
    %c0_i32_0 = arith.constant 0 : i32
    %c0_i32_1 = arith.constant 0 : i32
    return %c0_i32, %c0_i32_0 : i32, i32
  }
  func.func @transform_2(%arg0: i32) -> (i32, i32) {
    %c0_i32 = arith.constant 0 : i32
    %c0_i32_0 = arith.constant 0 : i32
    %c0_i32_1 = arith.constant 0 : i32
    return %c0_i32, %c0_i32_0 : i32, i32
  }
  func.func @transform_3(%arg0: i32) -> (i32, i32) {
    %c0_i32 = arith.constant 0 : i32
    %c0_i32_0 = arith.constant 0 : i32
    %c0_i32_1 = arith.constant 0 : i32
    return %c0_i32, %c0_i32_0 : i32, i32
  }
  func.func @transform_4(%arg0: i32) -> (i32, i32) {
    %c0_i32 = arith.constant 0 : i32
    %c0_i32_0 = arith.constant 0 : i32
    %c0_i32_1 = arith.constant 0 : i32
    return %c0_i32, %c0_i32_0 : i32, i32
  }
  func.func @transform_5(%arg0: i32) -> (i32, i32) {
    %c0_i32 = arith.constant 0 : i32
    %c0_i32_0 = arith.constant 0 : i32
    %c0_i32_1 = arith.constant 0 : i32
    return %c0_i32, %c0_i32_0 : i32, i32
  }
  func.func @transform_6(%arg0: i32) -> (i32, i32) {
    %c0_i32 = arith.constant 0 : i32
    %c0_i32_0 = arith.constant 0 : i32
    %c0_i32_1 = arith.constant 0 : i32
    return %c0_i32, %c0_i32_0 : i32, i32
  }
  func.func @transform_7(%arg0: i32) -> (i32, i32) {
    %c0_i32 = arith.constant 0 : i32
    %c0_i32_0 = arith.constant 0 : i32
    return %arg0, %c0_i32 : i32, i32
  }
}

</mosaic_0001>

<bundles_post_ra>
// kernel: tpu_custom_call.1
= control target key start
LH: loop header
LB: loop body
LE: loop exit
PB: predicated region body
PF: predicated region fallthrough
CT: control target
= control target key end

     0   :  { %12 = vsyncpa [#allocation3], 0  ;;  %s969_s0 = inlined_call_operand.vmem [shape: f32[8,16], index: 0, kind: input, shape index: {}]   ;;  %s970_s1 = inlined_call_operand.vmem [shape: bf16[16,256], index: 1, kind: input, shape index: {}]   ;;  %s971_s2 = inlined_call_operand.vmem [shape: f32[1,256], index: 2, kind: input, shape index: {}]   ;;  %s972_s3 = inlined_call_operand.hbm [shape: bf16[256,256], index: 3, kind: input, shape index: {}]   ;;  %s973_s4 = inlined_call_operand.vmem [shape: f32[1,256], index: 4, kind: input, shape index: {}]   ;;  %s974_s5 = inlined_call_operand.vmem [shape: bf16[256,16], index: 5, kind: input, shape index: {}]   ;;  %s975_s6 = inlined_call_operand.vmem [shape: f32[1,16], index: 6, kind: input, shape index: {}]   ;;  %s976_s7 = inlined_call_operand.hbm [shape: f32[8,16], index: 7, kind: output, shape index: {}]  }
   0x1   :  { %13 = vsyncpa [#allocation4], 0  ;;  %s24_s26 = sshll.u32 %s972_s3, 4  ;;  %s844_s27 = smov [#allocation2]   ;;  %s25_s26 = int_to_ptr.hbm [resolvable:$true] %s24_s26 }
   0x2   :  { %s26_s28 = sshll.u32 %s844_s27, 4  ;;  %s845_s29 = smov 128   ;;  %s27_s28 = int_to_ptr.vmem [resolvable:$true] %s26_s28 }
   0x3   :  { %s846_s30 = smov 8  }
   0x4   :  { %32 = dma.hbm_to_vmem [thread:$0]  %s25_s26, 4096, %s27_s28, [#allocation3], %s845_s29, %s845_s29, %s846_s30  }
   0x5   :  { %840 = dma.done.wait [#allocation3], 4096  }
   0x6   :  { %841 = vsyncadd [#allocation3], 4294963200  ;;  %v536_v0 = vld [vmem:[%s970_s1] sm:$0xf]  ;;  %v738_v1 = vld [vmem:[%s970_s1 + $0x4] sm:$0xf0] }
   0x7   :  { %v737_v2 = vld [vmem:[%s970_s1 + $0x4] sm:$0xf]  ;;  %v537_v3 = vor.u32 %v738_v1, %v536_v0  ;;  %v538_v4 = vld [vmem:[%s970_s1 + $0x8] sm:$0xf0]  ;;  %vm64_vm0 = vcmask 130048   ;;  %s847_s24 = smov [#allocation5]  }
   0x8   :  { %v44_v5 = vld [vmem:[%s969_s0] sm:$0xff]  ;;  %v602_v6 = vld [vmem:[#allocation2 + $0x70] sm:$0xf]  ;;  %v541_v7 = vor.u32 %v737_v2, %v538_v4  ;;  %v754_v9 = vld [vmem:[#allocation2 + $0x74] sm:$0xf0]  ;;  %s522_s25 = sshll.u32 %s847_s24, 4  ;;  %s523_s25 = int_to_ptr.vmem [resolvable:$true] %s522_s25 }
   0x9   :  { %v45_v8 = vpack.c.bf16 %v44_v5, %v44_v5  ;;  %v666_v10 = vld [vmem:[#allocation2 + $0xf0] sm:$0xf]  ;;  %v770_v11 = vld [vmem:[#allocation2 + $0xf4] sm:$0xf0]  ;;  %75 = vmatpush.bf16.msra.mxu0 %v537_v3  ;;  %v603_v12 = vor.u32 %v754_v9, %v602_v6  ;;  %v753_v14 = vld [vmem:[#allocation2 + $0x74] sm:$0xf] }
   0xa   :  { %v667_v13 = vor.u32 %v770_v11, %v666_v10  ;;  %v604_v15 = vld [vmem:[#allocation2 + $0x78] sm:$0xf0]  ;;  %v769_v16 = vld [vmem:[#allocation2 + $0xf4] sm:$0xf]  ;;  %88 = vmatpush.bf16.msra.mxu1 %v541_v7  ;;  %v594_v19 = vld [vmem:[#allocation2 + $0x60] sm:$0xf] }
   0xb   :  { %v607_v17 = vor.u32 %v753_v14, %v604_v15  ;;  %v668_v18 = vld [vmem:[#allocation2 + $0xf8] sm:$0xf0]  ;;  %v752_v20 = vld [vmem:[#allocation2 + $0x64] sm:$0xf0]  ;;  %296 = vmatpush.bf16.msra.mxu2 %v603_v12  ;;  %v658_v23 = vld [vmem:[#allocation2 + $0xe0] sm:$0xf] }
   0xc   :  { %309 = vmatpush.bf16.msra.mxu3 %v667_v13  ;;  %v671_v21 = vor.u32 %v769_v16, %v668_v18  ;;  %v595_v22 = vor.u32 %v752_v20, %v594_v19  ;;  %v768_v24 = vld [vmem:[#allocation2 + $0xe4] sm:$0xf0]  ;;  %v751_v25 = vld [vmem:[#allocation2 + $0x64] sm:$0xf]  ;;  %542 = vmatmul.msk.bf16.vlgmr.msra.gmra.mxu0 %vm64_vm0, %v45_v8  ;;  %v596_v27 = vld [vmem:[#allocation2 + $0x68] sm:$0xf0] }
   0xd   :  { %v659_v26 = vor.u32 %v768_v24, %v658_v23  ;;  %v767_v28 = vld [vmem:[#allocation2 + $0xe4] sm:$0xf]  ;;  %v660_v29 = vld [vmem:[#allocation2 + $0xe8] sm:$0xf0]  ;;  %543 = vmatmul.msk.bf16.vlgmr.msra.gmra.mxu1 %vm64_vm0, %v45_v8  ;;  %322 = vmatpush.bf16.msrb.mxu0 %v607_v17  ;;  %v599_v30 = vor.u32 %v751_v25, %v596_v27  ;;  %v586_v31 = vld [vmem:[#allocation2 + $0x50] sm:$0xf] }
   0xe   :  { %v750_v32 = vld [vmem:[#allocation2 + $0x54] sm:$0xf0]  ;;  %v650_v33 = vld [vmem:[#allocation2 + $0xd0] sm:$0xf]  ;;  %335 = vmatpush.bf16.msrb.mxu1 %v671_v21  ;;  %v663_v34 = vor.u32 %v767_v28, %v660_v29  ;;  %v749_v36 = vld [vmem:[#allocation2 + $0x54] sm:$0xf] }
   0xf   :  { %v766_v35 = vld [vmem:[#allocation2 + $0xd4] sm:$0xf0]  ;;  %v588_v37 = vld [vmem:[#allocation2 + $0x58] sm:$0xf0]  ;;  %297 = vmatpush.bf16.msra.mxu2 %v595_v22  ;;  %v587_v38 = vor.u32 %v750_v32, %v586_v31  ;;  %v765_v40 = vld [vmem:[#allocation2 + $0xd4] sm:$0xf] }
  0x10   :  { %310 = vmatpush.bf16.msra.mxu3 %v659_v26  ;;  %v651_v39 = vor.u32 %v766_v35, %v650_v33  ;;  %v652_v41 = vld [vmem:[#allocation2 + $0xd8] sm:$0xf0]  ;;  %v578_v42 = vld [vmem:[#allocation2 + $0x40] sm:$0xf]  ;;  %v748_v43 = vld [vmem:[#allocation2 + $0x44] sm:$0xf0]  ;;  %v591_v46 = vor.u32 %v749_v36, %v588_v37 }
  0x11   :  { %v642_v44 = vld [vmem:[#allocation2 + $0xc0] sm:$0xf]  ;;  %v764_v45 = vld [vmem:[#allocation2 + $0xc4] sm:$0xf0]  ;;  %323 = vmatpush.bf16.msrb.mxu0 %v599_v30  ;;  %v655_v47 = vor.u32 %v765_v40, %v652_v41  ;;  %v747_v48 = vld [vmem:[#allocation2 + $0x44] sm:$0xf]  ;;  %v579_v50 = vor.u32 %v748_v43, %v578_v42 }
  0x12   :  { %336 = vmatpush.bf16.msrb.mxu1 %v663_v34  ;;  %v580_v49 = vld [vmem:[#allocation2 + $0x48] sm:$0xf0]  ;;  %v643_v51 = vor.u32 %v764_v45, %v642_v44  ;;  %v763_v52 = vld [vmem:[#allocation2 + $0xc4] sm:$0xf]  ;;  %v570_v54 = vld [vmem:[#allocation2 + $0x30] sm:$0xf] }
  0x13   :  { %298 = vmatpush.bf16.msra.mxu2 %v587_v38  ;;  %v644_v53 = vld [vmem:[#allocation2 + $0xc8] sm:$0xf0]  ;;  %v746_v55 = vld [vmem:[#allocation2 + $0x34] sm:$0xf0]  ;;  %v634_v56 = vld [vmem:[#allocation2 + $0xb0] sm:$0xf]  ;;  %v583_v58 = vor.u32 %v747_v48, %v580_v49 }
  0x14   :  { %311 = vmatpush.bf16.msra.mxu3 %v651_v39  ;;  %v762_v57 = vld [vmem:[#allocation2 + $0xb4] sm:$0xf0]  ;;  %v647_v59 = vor.u32 %v763_v52, %v644_v53  ;;  %v745_v60 = vld [vmem:[#allocation2 + $0x34] sm:$0xf]  ;;  %v572_v61 = vld [vmem:[#allocation2 + $0x38] sm:$0xf0]  ;;  %v571_v63 = vor.u32 %v746_v55, %v570_v54 }
  0x15   :  { %324 = vmatpush.bf16.msrb.mxu0 %v591_v46  ;;  %v761_v62 = vld [vmem:[#allocation2 + $0xb4] sm:$0xf]  ;;  %v635_v0 = vor.u32 %v762_v57, %v634_v56  ;;  %v636_v1 = vld [vmem:[#allocation2 + $0xb8] sm:$0xf0]  ;;  %v562_v2 = vld [vmem:[#allocation2 + $0x20] sm:$0xf]  ;;  %v575_v6 = vor.u32 %v745_v60, %v572_v61 }
  0x16   :  { %337 = vmatpush.bf16.msrb.mxu1 %v655_v47  ;;  %v744_v3 = vld [vmem:[#allocation2 + $0x24] sm:$0xf0]  ;;  %v626_v4 = vld [vmem:[#allocation2 + $0xa0] sm:$0xf]  ;;  %v639_v7 = vor.u32 %v761_v62, %v636_v1  ;;  %v743_v8 = vld [vmem:[#allocation2 + $0x24] sm:$0xf] }
  0x17   :  { %299 = vmatpush.bf16.msra.mxu2 %v579_v50  ;;  %v760_v5 = vld [vmem:[#allocation2 + $0xa4] sm:$0xf0]  ;;  %v564_v9 = vld [vmem:[#allocation2 + $0x28] sm:$0xf0]  ;;  %v563_v10 = vor.u32 %v744_v3, %v562_v2  ;;  %v759_v12 = vld [vmem:[#allocation2 + $0xa4] sm:$0xf] }
  0x18   :  { %312 = vmatpush.bf16.msra.mxu3 %v643_v51  ;;  %v627_v11 = vor.u32 %v760_v5, %v626_v4  ;;  %v628_v13 = vld [vmem:[#allocation2 + $0xa8] sm:$0xf0]  ;;  %v567_v14 = vor.u32 %v743_v8, %v564_v9  ;;  %v554_v16 = vld [vmem:[#allocation2 + $0x10] sm:$0xf]  ;;  %v742_v17 = vld [vmem:[#allocation2 + $0x14] sm:$0xf0] }
  0x19   :  { %325 = vmatpush.bf16.msrb.mxu0 %v583_v58  ;;  %v631_v15 = vor.u32 %v759_v12, %v628_v13  ;;  %v618_v18 = vld [vmem:[#allocation2 + $0x90] sm:$0xf]  ;;  %v555_v19 = vor.u32 %v742_v17, %v554_v16  ;;  %v758_v20 = vld [vmem:[#allocation2 + $0x94] sm:$0xf0]  ;;  %v741_v21 = vld [vmem:[#allocation2 + $0x14] sm:$0xf] }
  0x1a   :  { %338 = vmatpush.bf16.msrb.mxu1 %v647_v59  ;;  %v556_v22 = vld [vmem:[#allocation2 + $0x18] sm:$0xf0]  ;;  %v619_v23 = vor.u32 %v758_v20, %v618_v18  ;;  %v757_v25 = vld [vmem:[#allocation2 + $0x94] sm:$0xf]  ;;  %v546_v28 = vld [vmem:[#allocation2] sm:$0xf] }
  0x1b   :  { %300 = vmatpush.bf16.msra.mxu2 %v571_v63  ;;  %v559_v24 = vor.u32 %v741_v21, %v556_v22  ;;  %v620_v26 = vld [vmem:[#allocation2 + $0x98] sm:$0xf0]  ;;  %v740_v29 = vld [vmem:[#allocation2 + $0x4] sm:$0xf0]  ;;  %v610_v30 = vld [vmem:[#allocation2 + $0x80] sm:$0xf] }
  0x1c   :  { %313 = vmatpush.bf16.msra.mxu3 %v635_v0  ;;  %v623_v27 = vor.u32 %v757_v25, %v620_v26  ;;  %v547_v31 = vor.u32 %v740_v29, %v546_v28  ;;  %v756_v32 = vld [vmem:[#allocation2 + $0x84] sm:$0xf0]  ;;  %v739_v33 = vld [vmem:[#allocation2 + $0x4] sm:$0xf]  ;;  %v548_v34 = vld [vmem:[#allocation2 + $0x8] sm:$0xf0]  ;;  %v510_v25 = vlaneseq }
  0x1d   :  { %326 = vmatpush.bf16.msrb.mxu0 %v575_v6  ;;  %v611_v35 = vor.u32 %v756_v32, %v610_v30  ;;  %v551_v36 = vor.u32 %v739_v33, %v548_v34  ;;  %v755_v37 = vld [vmem:[#allocation2 + $0x84] sm:$0xf]  ;;  %v612_v38 = vld [vmem:[#allocation2 + $0x88] sm:$0xf0]  ;;  %v786_v40 = vld [vmem:[%s974_s5 + $0x78] sm:$0xff]  ;;  %s524_s28 = sshll.u32 %s976_s7, 4  ;;  %s525_s28 = int_to_ptr.hbm [resolvable:$true] %s524_s28 }
  0x1e   :  { %339 = vmatpush.bf16.msrb.mxu1 %v639_v7  ;;  %v615_v39 = vor.u32 %v755_v37, %v612_v38  ;;  %v778_v41 = vld [vmem:[%s974_s5 + $0x38] sm:$0xff]  ;;  %v785_v42 = vld [vmem:[%s974_s5 + $0x70] sm:$0xff]  ;;  %v784_v44 = vld [vmem:[%s974_s5 + $0x68] sm:$0xff]  ;;  %v511_v28 = vand.u32 127, %v510_v25 }
  0x1f   :  { %301 = vmatpush.bf16.msra.mxu2 %v563_v10  ;;  %v777_v43 = vld [vmem:[%s974_s5 + $0x30] sm:$0xff]  ;;  %v776_v45 = vld [vmem:[%s974_s5 + $0x28] sm:$0xff]  ;;  %v783_v46 = vld [vmem:[%s974_s5 + $0x60] sm:$0xff] }
  0x20   :  { %314 = vmatpush.bf16.msra.mxu3 %v627_v11  ;;  %v775_v47 = vld [vmem:[%s974_s5 + $0x20] sm:$0xff]  ;;  %v782_v48 = vld [vmem:[%s974_s5 + $0x58] sm:$0xff]  ;;  %v781_v50 = vld [vmem:[%s974_s5 + $0x50] sm:$0xff]  ;;  %vm512_vm1 = vcmp.ge.s32.totalorder %v511_v28, 8 }
  0x21   :  { %327 = vmatpush.bf16.msrb.mxu0 %v567_v14  ;;  %v48_v49 = vld [vmem:[%s971_s2] sm:$0x3]  ;;  %v774_v63 = vld [vmem:[%s974_s5 + $0x18] sm:$0xff]  ;;  %v780_v0 = vld [vmem:[%s974_s5 + $0x48] sm:$0xff] }
  0x22   :  { %340 = vmatpush.bf16.msrb.mxu1 %v631_v15  ;;  %v50_v51 = vperm.slane %v48_v49, 0  ;;  %v51_v52 = vperm.slane %v48_v49, 1  ;;  %v773_v1 = vld [vmem:[%s974_s5 + $0x10] sm:$0xff]  ;;  %v779_v2 = vld [vmem:[%s974_s5 + $0x40] sm:$0xff]  ;;  %v772_v3 = vld [vmem:[%s974_s5 + $0x8] sm:$0xff] }
  0x23   :  { %302 = vmatpush.bf16.msra.mxu2 %v555_v19  ;;  %v771_v4 = vld [vmem:[%s974_s5] sm:$0xff] }
  0x24   :  { %315 = vmatpush.bf16.msra.mxu3 %v619_v23  ;;  %v130_v5 = vld [vmem:[%s973_s4] sm:$0x3] }
  0x25   :  { %328 = vmatpush.bf16.msrb.mxu0 %v559_v24  ;;  %v133_v6 = vperm.slane %v130_v5, 1  ;;  %v132_v11 = vperm.slane %v130_v5, 0  ;;  %v791_v26 = vld [vmem:[%s975_s6] ss:$0 sm:$0xff] }
  0x26   :  { %341 = vmatpush.bf16.msrb.mxu1 %v623_v27 }
  0x27   :  { %303 = vmatpush.bf16.msra.mxu2 %v547_v31 }
  0x28   :  { %316 = vmatpush.bf16.msra.mxu3 %v611_v35 }
  0x29   :  { %329 = vmatpush.bf16.msrb.mxu0 %v551_v36 }
  0x2a   :  { %342 = vmatpush.bf16.msrb.mxu1 %v615_v39 }
  0x2b   :  { %484 = vmatpush.bf16.msrb.mxu2 %v778_v41 }
  0x2c   :  { %497 = vmatpush.bf16.msrb.mxu3 %v786_v40 }
  0x2f   :  { %485 = vmatpush.bf16.msrb.mxu2 %v777_v43 }
  0x30   :  { %498 = vmatpush.bf16.msrb.mxu3 %v785_v42 }
  0x33   :  { %486 = vmatpush.bf16.msrb.mxu2 %v776_v45 }
  0x34   :  { %499 = vmatpush.bf16.msrb.mxu3 %v784_v44 }
  0x37   :  { %487 = vmatpush.bf16.msrb.mxu2 %v775_v47 }
  0x38   :  { %500 = vmatpush.bf16.msrb.mxu3 %v783_v46 }
  0x3b   :  { %488 = vmatpush.bf16.msrb.mxu2 %v774_v63 }
  0x3c   :  { %501 = vmatpush.bf16.msrb.mxu3 %v782_v48 }
  0x3f   :  { %489 = vmatpush.bf16.msrb.mxu2 %v773_v1 }
  0x40   :  { %502 = vmatpush.bf16.msrb.mxu3 %v781_v50 }
  0x43   :  { %490 = vmatpush.bf16.msrb.mxu2 %v772_v3 }
  0x44   :  { %503 = vmatpush.bf16.msrb.mxu3 %v780_v0 }
  0x47   :  { %491 = vmatpush.bf16.msrb.mxu2 %v771_v4 }
  0x48   :  { %504 = vmatpush.bf16.msrb.mxu3 %v779_v2 }
  0x89   :  { %v77_v53 = vpop.f32.mrf.mxu0 }
  0x8a   :  { %v78_v54 = vadd.f32 %v77_v53, %v50_v51  ;;  %v90_v55 = vpop.f32.mrf.mxu1 }
  0x8b   :  { %v91_v56 = vadd.f32 %v90_v55, %v51_v52 }
  0x8c   :  { %v94_v57 = vmax.f32 %v78_v54, 0.0 }
  0x8d   :  { %v95_v58 = vmax.f32 %v91_v56, 0.0 }
  0x8e   :  { %v96_v59 = vpack.c.bf16 %v94_v57, %v94_v57 }
  0x8f   :  { %v97_v60 = vpack.c.bf16 %v95_v58, %v95_v58 }
  0x90   :  { %304 = vmatmul.bf16.vlgmr.msra.gmra.mxu2 %v96_v59  ;;  %330 = vmatmul.bf16.vlgmr.msrb.gmra.mxu0 %v96_v59 }
  0x91   :  { %317 = vmatmul.bf16.vlgmr.msra.gmra.mxu3 %v97_v60  ;;  %343 = vmatmul.bf16.vlgmr.msrb.gmra.mxu1 %v97_v60  ;;  %v79_v61 = vpop.f32.mrf.mxu0 }
  0x92   :  { %v92_v62 = vpop.f32.mrf.mxu1 }
 0x10d   :  { %v331_v7 = vpop.f32.mrf.mxu0 }
 0x10e   :  { %v332_v8 = vadd.f32 %v331_v7, %v133_v6  ;;  %v344_v9 = vpop.f32.mrf.mxu1 }
 0x110   :  { %v345_v10 = vadd.f32 %v344_v9, %v332_v8 }
 0x112   :  { %v349_v12 = vmax.f32 %v345_v10, 0.0 }
 0x113   :  { %v305_v13 = vpop.f32.mrf.mxu2 }
 0x114   :  { %v351_v14 = vpack.c.bf16 %v349_v12, %v349_v12  ;;  %v306_v15 = vadd.f32 %v305_v13, %v132_v11  ;;  %v318_v16 = vpop.f32.mrf.mxu3 }
 0x115   :  { %v333_v17 = vpop.f32.mrf.mxu0 }
 0x116   :  { %v319_v18 = vadd.f32 %v318_v16, %v306_v15  ;;  %v346_v19 = vpop.f32.mrf.mxu1  ;;  %505 = vmatmul.bf16.vlgmr.msrb.gmra.mxu3 %v351_v14 }
 0x118   :  { %v348_v20 = vmax.f32 %v319_v18, 0.0 }
 0x11a   :  { %v350_v21 = vpack.c.bf16 %v348_v20, %v348_v20 }
 0x11b   :  { %v307_v22 = vpop.f32.mrf.mxu2 }
 0x11c   :  { %v320_v23 = vpop.f32.mrf.mxu3  ;;  %492 = vmatmul.bf16.vlgmr.msrb.gmra.mxu2 %v350_v21 }
 0x199   :  { %v506_v24 = vpop.f32.mrf.mxu3 }
 0x19f   :  { %v493_v27 = vpop.f32.mrf.mxu2 }
 0x1a0   :  { %v494_v29 = vadd.f32 %v791_v26, %v493_v27 }
 0x1a1   :  { %v508_v30 = vpop.f32.mrf.mxu3 }
 0x1a2   :  { %v507_v31 = vadd.f32 %v506_v24, %v494_v29 }
 0x1a4   :  { %v736_v32 = vclamps-f32 %v507_v31, 10.0 }
 0x1a6   :  { %v515_v33 = vsel %vm512_vm1, %v736_v32, %v507_v31 }
 0x1a7   :  { %v495_v34 = vpop.f32.mrf.mxu2  ;;  %516 = vst.msk [vmem:[#allocation5] sm:$0xff] %vm64_vm0, %v515_v33 }
 0x1a8   :  { %527 = dma.vmem_to_hbm [thread:$0]  %s523_s25, 128, %s525_s28, [#allocation4]  }
 0x1a9   :  { %842 = dma.done.wait [#allocation4], 128  }
 0x1aa   :  { %843 = vsyncadd [#allocation4], 4294967168 }
 0x1ab   :  { %532 = vsyncpa [#allocation3], 1 }
 0x1ac   :  { %533 = vsyncpa [#allocation4], 1 }

</bundles_post_ra>
